<compile_context>
chip_gen: v7x
topology: tpu7x:2x2x1
jax: 0.10.0
libtpu: 0.0.40
codegen_flags: <defaults>
</compile_context>

<pallas_src>
import functools

import jax
import jax.numpy as jnp
from jax.experimental import pallas as pl
from jax.experimental.pallas import tpu as pltpu


def _recip(x):
    # EUP approximate reciprocal + one Newton-Raphson step (~f32 accurate).  The NR step
    # is kept on purpose: it costs ~3 VALU ops of ~27 per conv element but keeps the
    # exact-GELU erf at ~1e-7 error instead of ~1e-3.
    r = pl.reciprocal(x, approx=True)
    return r * (2.0 - x * r)


def _erf(x):
    # Abramowitz & Stegun 7.1.26 rational approximation (|err| < 1.5e-7); only ops with
    # guaranteed TPU lowerings (exp / reciprocal on the EUP, VALU mul/add/select).
    a1, a2, a3, a4, a5 = 0.254829592, -0.284496736, 1.421413741, -1.453152027, 1.061405429
    p = 0.3275911
    s = jnp.where(x >= 0.0, 1.0, -1.0)
    ax = jnp.abs(x)
    t = _recip(1.0 + p * ax)
    poly = ((((a5 * t + a4) * t + a3) * t + a2) * t + a1) * t
    return s * (1.0 - poly * jnp.exp(-ax * ax))


def _gelu_exact(x):
    # PyTorch nn.GELU() default (approximate='none'): 0.5*x*(1+erf(x/sqrt(2)))
    return 0.5 * x * (1.0 + _erf(x * 0.7071067811865476))


def _conv_gelu_pool_stats_kernel(x_ref, w2_ref, gsign_ref,
                                 ext_ref, sum_ref, sq_ref, *, K, C):
    """Fused Conv1d + GELU + (signed) stride-K max-pool + BN-stat partials for one tile.

    x_ref:     (Sp, Lt)   polyphase input; column l=(b*P+p), sublane s holds
                          xp[b, p*K + s] (rows >= 2K-1 and padded columns are zero).
    w2_ref:    (K*C, Sp)  phase-stacked Conv1d weight: w2[j*C+c, s] = w[c, s-j].
    gsign_ref: (C, 1)     sign(gamma); selects max vs min pooling once the per-channel
                          BN affine is applied after this kernel.
    ext_ref:   (C, Lt)    running max_j( sign(gamma_c) * GELU(conv)_phase_j ).
    sum_ref:   (1, C, 1)  per-tile per-channel sum of GELU(conv)       (BN statistics).
    sq_ref:    (1, C, 1)  per-tile per-channel sum of squares          (BN statistics).
    """
    x = x_ref[...]                                               # (Sp, Lt)
    w2 = w2_ref[...]                                             # (K*C, Sp)
    lt = ext_ref.shape[-1]
    gsign = jnp.broadcast_to(gsign_ref[...], (C, lt))            # hoisted lane broadcast

    # All K pooling phases of the K-tap Conv1d as ONE MXU matmul (keeps the MACs off the
    # binding VALU slots):  y[j*C + c, l] = conv[b, c, p*K + j]  for l = b*P + p.
    y = jnp.dot(w2, x, preferred_element_type=jnp.float32)       # (K*C, Lt)
    g = _gelu_exact(y)                                           # (K*C, Lt)

    # Static sublane slices (C is a multiple of 8) are free; K is small -> unrolled.
    blk = g[0:C, :]
    ext = gsign * blk
    s_acc = blk
    q_acc = blk * blk
    for j in range(1, K):
        blk = g[j * C:(j + 1) * C, :]
        ext = jnp.maximum(ext, gsign * blk)
        s_acc = s_acc + blk
        q_acc = q_acc + blk * blk

    ext_ref[...] = ext
    sum_ref[...] = jnp.sum(s_acc, axis=1, keepdims=True)[None]   # (1, C, 1)
    sq_ref[...] = jnp.sum(q_acc, axis=1, keepdims=True)[None]    # (1, C, 1)


def conv_embedding_forward(x, conv_weight, gamma, beta, *, channel_freq,
                           lane_tile=None, eps=1e-5):
    """x: (B, N). conv_weight: (C, 1, K). gamma/beta: (C,). Returns (B, N//K, C) f32."""
    B, N = x.shape
    K = int(channel_freq)
    C = conv_weight.shape[0]
    if N % K != 0:
        # TODO(synk): support N % K != 0 (MaxPool drops the conv tail but BatchNorm stats
        # still include it); the module is always used with N a multiple of channel_freq.
        raise ValueError("num. steps must be a multiple of channel_freq")
    P = N // K                       # pooled length
    L = B * P                        # batch * pooled-time, flattened onto the lane axis
    S = 2 * K - 1                    # polyphase taps needed per pooled output column
    Sp = ((S + 7) // 8) * 8          # pad taps up to a full sublane group

    # --- PyTorch pad_inputs (stride=1): total pad K-1, left-light split --------------
    pad_left = (K - 1) // 2
    pad_right = (K - 1) - pad_left
    xf = x.astype(jnp.float32)
    xp = jnp.pad(xf, ((0, 0), (pad_left, pad_right)))            # (B, N + K - 1)

    # --- polyphase layout, batch*time on lanes:  x2d[s, b*P+p] = xp[b, p*K + s] ------
    # (input-sized strided slices in XLA; tiny next to the (K*C, L) activations)
    cols = [xp[:, s::K][:, :P] for s in range(S)]                # each (B, P)
    x2d = jnp.stack(cols, axis=0).reshape(S, L)                  # (S, B*P)

    # --- lane tiling: always lane-dense (multiple of 128), VMEM-bounded --------------
    if lane_tile is None:
        lane_tile = 4096
    lane_tile = max(128, (int(lane_tile) // 128) * 128)
    l128 = ((L + 127) // 128) * 128
    lt = min(lane_tile, l128)
    if l128 // lt < 2 and l128 >= 256:
        lt = max(128, ((l128 // 2) // 128) * 128)   # >=2 'parallel' steps (v7x: 2 TCs)
    G = (L + lt - 1) // lt
    Lp = G * lt
    # zero padding contributes 0 to conv -> GELU(0)=0 -> 0 to the BN sums; the padded
    # extremum columns are sliced off below.
    x2d = jnp.pad(x2d, ((0, Sp - S), (0, Lp - L)))               # (Sp, Lp)

    # --- phase-stacked Conv1d weight for a single MXU matmul -------------------------
    # w2[j*C + c, s] = w[c, s - j] for j <= s < j + K, else 0.
    w = conv_weight.reshape(C, K).astype(jnp.float32)
    w2 = jnp.zeros((K * C, Sp), jnp.float32)
    for j in range(K):
        w2 = w2.at[j * C:(j + 1) * C, j:j + K].set(w)

    # gamma's sign decides whether post-BN MaxPool is a max or a min of GELU(conv):
    #   max_j(scale*y_j + shift) = |scale| * max_j(sign(gamma)*y_j) + shift
    gsign = jnp.where(gamma >= 0, 1.0, -1.0).astype(jnp.float32).reshape(C, 1)

    ext, sums, sqs = pl.pallas_call(
        functools.partial(_conv_gelu_pool_stats_kernel, K=K, C=C),
        grid=(G,),
        in_specs=[
            pl.BlockSpec((Sp, lt), lambda i: (0, i)),
            pl.BlockSpec((K * C, Sp), lambda i: (0, 0)),
            pl.BlockSpec((C, 1), lambda i: (0, 0)),
        ],
        out_specs=[
            pl.BlockSpec((C, lt), lambda i: (0, i)),
            pl.BlockSpec((1, C, 1), lambda i: (i, 0, 0)),
            pl.BlockSpec((1, C, 1), lambda i: (i, 0, 0)),
        ],
        out_shape=[
            jax.ShapeDtypeStruct((C, Lp), jnp.float32),
            jax.ShapeDtypeStruct((G, C, 1), jnp.float32),
            jax.ShapeDtypeStruct((G, C, 1), jnp.float32),
        ],
        compiler_params=pltpu.CompilerParams(
            dimension_semantics=("parallel",),       # independent lane tiles (megacore)
            vmem_limit_bytes=40 * 1024 * 1024,       # headroom within v7x's 64 MiB VMEM
        ),
    )(x2d, w2, gsign)

    # --- finalize BatchNorm1d training-mode batch statistics (biased var) in XLA -----
    # TODO(synk): eval-mode running_mean/running_var tracking is not modeled.
    # TODO(synk): E[x^2]-E[x]^2 can cancel for very large B*N; use a centered/Welford
    # in-kernel accumulation if that regime matters.
    count = float(B * N)
    s_tot = jnp.sum(sums, axis=0)[:, 0]                           # (C,)
    q_tot = jnp.sum(sqs, axis=0)[:, 0]                            # (C,)
    mean = s_tot / count
    var = jnp.maximum(q_tot / count - mean * mean, 0.0)
    inv_std = jax.lax.rsqrt(var + eps)
    g32 = gamma.astype(jnp.float32)
    b32 = beta.astype(jnp.float32)
    # Kernel already pooled sign(gamma)*GELU(conv), so fold the affine with |gamma|.
    scale_abs = (jnp.abs(g32) * inv_std)[:, None]                 # (C, 1)
    shift = (b32 - mean * g32 * inv_std)[:, None]                 # (C, 1)

    out2d = scale_abs * ext[:, :L] + shift                        # (C, B*P), output-sized
    # 'b d n -> b n d'
    return jnp.transpose(out2d.reshape(C, B, P), (1, 2, 0))       # (B, P, C)


if __name__ == "__main__":
    # Small shapes consistent with the module:
    B, N = 2, 16          # (batch size, num. steps)
    K = 4                 # args.ds_info['channel_freq'][channel]
    C = 32                # args.emb_num_filters

    key = jax.random.PRNGKey(0)
    kx, kw, kg, kb = jax.random.split(key, 4)

    x = jax.random.normal(kx, (B, N), dtype=jnp.float32)

    # Conv1d(1, C, K, bias=False) weight: (C, 1, K); uniform init with bound 1/sqrt(K).
    bound = 1.0 / (1 * K) ** 0.5
    conv_weight = jax.random.uniform(kw, (C, 1, K), dtype=jnp.float32,
                                     minval=-bound, maxval=bound)

    # Mixed-sign gamma exercises both the max- and min-pooling (negative scale) branches.
    gamma = jax.random.normal(kg, (C,), dtype=jnp.float32)
    beta = 0.1 * jax.random.normal(kb, (C,), dtype=jnp.float32)

    out = conv_embedding_forward(x, conv_weight, gamma, beta, channel_freq=K)
    jax.block_until_ready(out)
    assert out.shape == (B, N // K, C), out.shape

    # --- pure-JAX reference (mirrors the PyTorch module) for a correctness check -----
    pad_left = (K - 1) // 2
    pad_right = (K - 1) - pad_left
    xp_ref = jnp.pad(x, ((0, 0), (pad_left, pad_right)))
    patches = jnp.stack([xp_ref[:, k:k + N] for k in range(K)], axis=-1)   # (B, N, K)
    conv = jnp.einsum('bnk,ck->bcn', patches, conv_weight.reshape(C, K))   # (B, C, N)
    act = jax.nn.gelu(conv, approximate=False)
    mean = jnp.mean(act, axis=(0, 2), keepdims=True)
    var = jnp.mean((act - mean) ** 2, axis=(0, 2), keepdims=True)
    bn = (act - mean) * jax.lax.rsqrt(var + 1e-5)
    bn = bn * gamma.reshape(1, C, 1) + beta.reshape(1, C, 1)
    P = N // K
    ref = jnp.max(bn[:, :, :P * K].reshape(B, C, P, K), axis=-1)           # (B, C, P)
    ref = jnp.transpose(ref, (0, 2, 1))                                    # (B, P, C)

    err = float(jnp.max(jnp.abs(out - ref)))
    assert jnp.allclose(out, ref, atol=5e-4, rtol=5e-4), err

    print("KERNEL_OK")
</pallas_src>

<mosaic_0001>
module attributes {stable_mosaic.version = 11 : i64} {
  func.func @_conv_gelu_pool_stats_kernel(%arg0: i32, %arg1: memref<8x128xf32, #tpu.memory_space<vmem>>, %arg2: memref<128x8xf32, #tpu.memory_space<vmem>>, %arg3: memref<32x1xf32, #tpu.memory_space<vmem>>, %arg4: memref<32x128xf32, #tpu.memory_space<vmem>>, %arg5: memref<1x32x1xf32, #tpu.memory_space<vmem>>, %arg6: memref<1x32x1xf32, #tpu.memory_space<vmem>>) attributes {dimension_semantics = [#tpu.dimension_semantics<parallel>], iteration_bounds = array<i64: 1>, scalar_prefetch = 0 : i64, scratch_operands = 0 : i64, tpu.core_type = #tpu.core_type<tc>, window_params = [{transform_indices = @transform_0, window_bounds = array<i64: 8, 128>}, {pipeline_mode = #tpu.pipeline_mode<synchronous>, transform_indices = @transform_1, window_bounds = array<i64: 128, 8>}, {pipeline_mode = #tpu.pipeline_mode<synchronous>, transform_indices = @transform_2, window_bounds = array<i64: 32, 1>}, {transform_indices = @transform_3, window_bounds = array<i64: 32, 128>}, {transform_indices = @transform_4, window_bounds = array<i64: 1, 32, 1>}, {transform_indices = @transform_5, window_bounds = array<i64: 1, 32, 1>}]} {
    %c0 = arith.constant 0 : index
    %c0_0 = arith.constant 0 : index
    %0 = vector.load %arg1[%c0, %c0_0] : memref<8x128xf32, #tpu.memory_space<vmem>>, vector<8x128xf32>
    %c0_1 = arith.constant 0 : index
    %c0_2 = arith.constant 0 : index
    %1 = vector.load %arg2[%c0_1, %c0_2] : memref<128x8xf32, #tpu.memory_space<vmem>>, vector<128x8xf32>
    %c0_3 = arith.constant 0 : index
    %c0_4 = arith.constant 0 : index
    %2 = vector.load %arg3[%c0_3, %c0_4] : memref<32x1xf32, #tpu.memory_space<vmem>>, vector<32x1xf32>
    %3 = vector.shape_cast %2 : vector<32x1xf32> to vector<32x1xf32>
    %4 = vector.broadcast %3 : vector<32x1xf32> to vector<32x128xf32>
    %cst = arith.constant dense<0.000000e+00> : vector<128x128xf32>
    %5 = tpu.matmul %1, %0, %cst {dimension_numbers = #tpu.dot_dimension_numbers<[1], [0], [0], [1], [0, 0, 1, 1], [], []>} : vector<128x8xf32>, vector<8x128xf32>, vector<128x128xf32> -> vector<128x128xf32>
    %cst_5 = arith.constant 5.000000e-01 : f32
    %6 = vector.broadcast %cst_5 : f32 to vector<128x128xf32>
    %7 = arith.mulf %6, %5 : vector<128x128xf32>
    %cst_6 = arith.constant 0.707106769 : f32
    %8 = vector.broadcast %cst_6 : f32 to vector<128x128xf32>
    %9 = arith.mulf %5, %8 : vector<128x128xf32>
    %cst_7 = arith.constant 0.000000e+00 : f32
    %10 = vector.broadcast %cst_7 : f32 to vector<128x128xf32>
    %11 = arith.cmpf oge, %9, %10 : vector<128x128xf32>
    %cst_8 = arith.constant 1.000000e+00 : f32
    %cst_9 = arith.constant -1.000000e+00 : f32
    %12 = vector.broadcast %cst_8 : f32 to vector<128x128xf32>
    %13 = vector.broadcast %cst_9 : f32 to vector<128x128xf32>
    %14 = arith.select %11, %12, %13 : vector<128x128xi1>, vector<128x128xf32>
    %15 = math.absf %9 : vector<128x128xf32>
    %cst_10 = arith.constant 0.327591091 : f32
    %16 = vector.broadcast %cst_10 : f32 to vector<128x128xf32>
    %17 = arith.mulf %16, %15 : vector<128x128xf32>
    %cst_11 = arith.constant 1.000000e+00 : f32
    %18 = vector.broadcast %cst_11 : f32 to vector<128x128xf32>
    %19 = arith.addf %18, %17 : vector<128x128xf32>
    %20 = tpu.reciprocal %19 {approx = true} : vector<128x128xf32> -> vector<128x128xf32>
    %21 = arith.mulf %19, %20 : vector<128x128xf32>
    %cst_12 = arith.constant 2.000000e+00 : f32
    %22 = vector.broadcast %cst_12 : f32 to vector<128x128xf32>
    %23 = arith.subf %22, %21 : vector<128x128xf32>
    %24 = arith.mulf %20, %23 : vector<128x128xf32>
    %cst_13 = arith.constant 1.06140542 : f32
    %25 = vector.broadcast %cst_13 : f32 to vector<128x128xf32>
    %26 = arith.mulf %25, %24 : vector<128x128xf32>
    %cst_14 = arith.constant -1.45315206 : f32
    %27 = vector.broadcast %cst_14 : f32 to vector<128x128xf32>
    %28 = arith.addf %26, %27 : vector<128x128xf32>
    %29 = arith.mulf %28, %24 : vector<128x128xf32>
    %cst_15 = arith.constant 1.42141378 : f32
    %30 = vector.broadcast %cst_15 : f32 to vector<128x128xf32>
    %31 = arith.addf %29, %30 : vector<128x128xf32>
    %32 = arith.mulf %31, %24 : vector<128x128xf32>
    %cst_16 = arith.constant -0.284496725 : f32
    %33 = vector.broadcast %cst_16 : f32 to vector<128x128xf32>
    %34 = arith.addf %32, %33 : vector<128x128xf32>
    %35 = arith.mulf %34, %24 : vector<128x128xf32>
    %cst_17 = arith.constant 0.254829586 : f32
    %36 = vector.broadcast %cst_17 : f32 to vector<128x128xf32>
    %37 = arith.addf %35, %36 : vector<128x128xf32>
    %38 = arith.mulf %37, %24 : vector<128x128xf32>
    %cst_18 = arith.constant 0.000000e+00 : f32
    %39 = vector.broadcast %cst_18 : f32 to vector<128x128xf32>
    %40 = arith.subf %39, %15 : vector<128x128xf32>
    %41 = arith.mulf %40, %15 : vector<128x128xf32>
    %42 = math.exp %41 : vector<128x128xf32>
    %43 = arith.mulf %38, %42 : vector<128x128xf32>
    %cst_19 = arith.constant 1.000000e+00 : f32
    %44 = vector.broadcast %cst_19 : f32 to vector<128x128xf32>
    %45 = arith.subf %44, %43 : vector<128x128xf32>
    %46 = arith.mulf %14, %45 : vector<128x128xf32>
    %cst_20 = arith.constant 1.000000e+00 : f32
    %47 = vector.broadcast %cst_20 : f32 to vector<128x128xf32>
    %48 = arith.addf %47, %46 : vector<128x128xf32>
    %49 = arith.mulf %7, %48 : vector<128x128xf32>
    %50 = vector.extract_strided_slice %49 {offsets = [0, 0], sizes = [32, 128], strides = [1, 1]} : vector<128x128xf32> to vector<32x128xf32>
    %51 = arith.mulf %4, %50 : vector<32x128xf32>
    %52 = arith.mulf %50, %50 : vector<32x128xf32>
    %53 = vector.extract_strided_slice %49 {offsets = [32, 0], sizes = [32, 128], strides = [1, 1]} : vector<128x128xf32> to vector<32x128xf32>
    %54 = arith.mulf %4, %53 : vector<32x128xf32>
    %55 = arith.maximumf %51, %54 : vector<32x128xf32>
    %56 = arith.addf %50, %53 : vector<32x128xf32>
    %57 = arith.mulf %53, %53 : vector<32x128xf32>
    %58 = arith.addf %52, %57 : vector<32x128xf32>
    %59 = vector.extract_strided_slice %49 {offsets = [64, 0], sizes = [32, 128], strides = [1, 1]} : vector<128x128xf32> to vector<32x128xf32>
    %60 = arith.mulf %4, %59 : vector<32x128xf32>
    %61 = arith.maximumf %55, %60 : vector<32x128xf32>
    %62 = arith.addf %56, %59 : vector<32x128xf32>
    %63 = arith.mulf %59, %59 : vector<32x128xf32>
    %64 = arith.addf %58, %63 : vector<32x128xf32>
    %65 = vector.extract_strided_slice %49 {offsets = [96, 0], sizes = [32, 128], strides = [1, 1]} : vector<128x128xf32> to vector<32x128xf32>
    %66 = arith.mulf %4, %65 : vector<32x128xf32>
    %67 = arith.maximumf %61, %66 : vector<32x128xf32>
    %68 = arith.addf %62, %65 : vector<32x128xf32>
    %69 = arith.mulf %65, %65 : vector<32x128xf32>
    %70 = arith.addf %64, %69 : vector<32x128xf32>
    %c0_21 = arith.constant 0 : index
    %c0_22 = arith.constant 0 : index
    %71 = vector.load %arg4[%c0_21, %c0_22] : memref<32x128xf32, #tpu.memory_space<vmem>>, vector<32x128xf32>
    tpu.vector_store %arg4[%c0_21, %c0_22], %67 {strides = array<i32>} : memref<32x128xf32, #tpu.memory_space<vmem>>, vector<32x128xf32>,
    %cst_23 = arith.constant dense<0.000000e+00> : vector<32xf32>
    %72 = vector.multi_reduction <add>, %68, %cst_23 [1] : vector<32x128xf32> to vector<32xf32>
    %73 = vector.shape_cast %72 : vector<32xf32> to vector<32x1xf32>
    %74 = vector.shape_cast %73 : vector<32x1xf32> to vector<1x32x1xf32>
    %c0_24 = arith.constant 0 : index
    %c0_25 = arith.constant 0 : index
    %c0_26 = arith.constant 0 : index
    %75 = vector.load %arg5[%c0_24, %c0_25, %c0_26] : memref<1x32x1xf32, #tpu.memory_space<vmem>>, vector<1x32x1xf32>
    tpu.vector_store %arg5[%c0_24, %c0_25, %c0_26], %74 {strides = array<i32>} : memref<1x32x1xf32, #tpu.memory_space<vmem>>, vector<1x32x1xf32>,
    %cst_27 = arith.constant dense<0.000000e+00> : vector<32xf32>
    %76 = vector.multi_reduction <add>, %70, %cst_27 [1] : vector<32x128xf32> to vector<32xf32>
    %77 = vector.shape_cast %76 : vector<32xf32> to vector<32x1xf32>
    %78 = vector.shape_cast %77 : vector<32x1xf32> to vector<1x32x1xf32>
    %c0_28 = arith.constant 0 : index
    %c0_29 = arith.constant 0 : index
    %c0_30 = arith.constant 0 : index
    %79 = vector.load %arg6[%c0_28, %c0_29, %c0_30] : memref<1x32x1xf32, #tpu.memory_space<vmem>>, vector<1x32x1xf32>
    tpu.vector_store %arg6[%c0_28, %c0_29, %c0_30], %78 {strides = array<i32>} : memref<1x32x1xf32, #tpu.memory_space<vmem>>, vector<1x32x1xf32>,
    return
  }
  func.func @transform_0(%arg0: i32) -> (i32, i32) {
    %c0_i32 = arith.constant 0 : i32
    %c0_i32_0 = arith.constant 0 : i32
    return %c0_i32, %arg0 : i32, i32
  }
  func.func @transform_1(%arg0: i32) -> (i32, i32) {
    %c0_i32 = arith.constant 0 : i32
    %c0_i32_0 = arith.constant 0 : i32
    %c0_i32_1 = arith.constant 0 : i32
    return %c0_i32, %c0_i32_0 : i32, i32
  }
  func.func @transform_2(%arg0: i32) -> (i32, i32) {
    %c0_i32 = arith.constant 0 : i32
    %c0_i32_0 = arith.constant 0 : i32
    %c0_i32_1 = arith.constant 0 : i32
    return %c0_i32, %c0_i32_0 : i32, i32
  }
  func.func @transform_3(%arg0: i32) -> (i32, i32) {
    %c0_i32 = arith.constant 0 : i32
    %c0_i32_0 = arith.constant 0 : i32
    return %c0_i32, %arg0 : i32, i32
  }
  func.func @transform_4(%arg0: i32) -> (i32, i32, i32) {
    %c0_i32 = arith.constant 0 : i32
    %c0_i32_0 = arith.constant 0 : i32
    %c0_i32_1 = arith.constant 0 : i32
    return %arg0, %c0_i32, %c0_i32_0 : i32, i32, i32
  }
  func.func @transform_5(%arg0: i32) -> (i32, i32, i32) {
    %c0_i32 = arith.constant 0 : i32
    %c0_i32_0 = arith.constant 0 : i32
    %c0_i32_1 = arith.constant 0 : i32
    return %arg0, %c0_i32, %c0_i32_0 : i32, i32, i32
  }
}

</mosaic_0001>

<bundles_post_ra>
// kernel: tpu_custom_call.1
= control target key start
LH: loop header
LB: loop body
LE: loop exit
PB: predicated region body
PF: predicated region fallthrough
CT: control target
= control target key end

     0   :  { %vm59_vm0 = vcmask 64512   ;;  %v994_v12 = vmov 0   ;;  %s1583_s0 = inlined_call_operand.vmem [shape: f32[8,128], index: 0, kind: input, shape index: {}]   ;;  %s1584_s1 = inlined_call_operand.vmem [shape: f32[128,8], index: 1, kind: input, shape index: {}]   ;;  %s1585_s2 = inlined_call_operand.vmem [shape: f32[32,1], index: 2, kind: input, shape index: {}]   ;;  %s1586_s3 = inlined_call_operand.hbm [shape: f32[32,128], index: 3, kind: output, shape index: {0}]   ;;  %s1587_s4 = inlined_call_operand.vmem [shape: f32[1,32,1], index: 4, kind: output, shape index: {1}]   ;;  %s1588_s5 = inlined_call_operand.vmem [shape: f32[1,32,1], index: 5, kind: output, shape index: {2}]  }
   0x1   :  { %v18_v0 = vld [vmem:[%s1583_s0] sm:$0xff]  ;;  %v20_v3 = vld [vmem:[%s1584_s1 + $0x8] sm:$0xff]  ;;  %v21_v5 = vld [vmem:[%s1584_s1 + $0x10] sm:$0xff]  ;;  %904 = vset.pattern.permute.xlu0 %v994_v12  ;;  %905 = vset.pattern.permute.xlu1 %v994_v12 }
   0x2   :  { %v19_v1 = vld [vmem:[%s1584_s1] sm:$0xff]  ;;  %871 = vmatprep.subr.mxu0 %v18_v0  ;;  %897 = vmatprep.subr.mxu1 %v18_v0  ;;  %v28_v4 = vld [vmem:[%s1584_s1 + $0x48] sm:$0xff]  ;;  %v29_v6 = vld [vmem:[%s1584_s1 + $0x50] sm:$0xff] }
   0x3   :  { %v27_v2 = vld [vmem:[%s1584_s1 + $0x40] sm:$0xff]  ;;  %872 = vmatpush3.msra.mxu0 %v18_v0  ;;  %898 = vmatpush3.msra.mxu1 %v18_v0  ;;  %v22_v7 = vld [vmem:[%s1584_s1 + $0x18] sm:$0xff]  ;;  %v37_v13 = vld [vmem:[%s1585_s2 + $0x10] sm:$0xff] }
   0x4   :  { %873 = vmatprep.mubr.msk.f32.mxu0 %vm59_vm0, %v19_v1  ;;  %885 = vmatprep.mubr.msk.f32.mxu1 %vm59_vm0, %v27_v2  ;;  %v30_v8 = vld [vmem:[%s1584_s1 + $0x58] sm:$0xff]  ;;  %v35_v9 = vld [vmem:[%s1585_s2] sm:$0xff] }
   0x5   :  { %874 = vmatmul.mubr.msk.f32.vlgmr.msra.gmra.mrb[0].mxu0 %vm59_vm0, %v20_v3  ;;  %886 = vmatmul.mubr.msk.f32.vlgmr.msra.gmra.mrb[0].mxu1 %vm59_vm0, %v28_v4  ;;  %v23_v10 = vld [vmem:[%s1584_s1 + $0x20] sm:$0xff] }
   0x6   :  { %876 = vmatprep.mubr.msk.f32.mxu0 %vm59_vm0, %v21_v5  ;;  %888 = vmatprep.mubr.msk.f32.mxu1 %vm59_vm0, %v29_v6  ;;  %v31_v11 = vld [vmem:[%s1584_s1 + $0x60] sm:$0xff] }
   0x7   :  { %41 = vperm.xlu0 %904, %v35_v9   ;;  %51 = vperm.xlu1 %905, %v37_v13  }
   0x8   :  { %11 = vsyncpa [#allocation3], 0  ;;  %v36_v14 = vld [vmem:[%s1585_s2 + $0x8] sm:$0xff]  ;;  %v38_v15 = vld [vmem:[%s1585_s2 + $0x18] sm:$0xff]  ;;  %v995_v48 = vmov -1.0  }
   0x9   :  { %877 = vmatmul.mubr.msk.f32.gmra.mrb[2].mxu0 %vm59_vm0, %v22_v7  ;;  %889 = vmatmul.mubr.msk.f32.gmra.mrb[2].mxu1 %vm59_vm0, %v30_v8  ;;  %v24_v16 = vld [vmem:[%s1584_s1 + $0x28] sm:$0xff]  ;;  %v25_v18 = vld [vmem:[%s1584_s1 + $0x30] sm:$0xff]  ;;  %v26_v20 = vld [vmem:[%s1584_s1 + $0x38] sm:$0xff] }
   0xa   :  { %879 = vmatprep.mubr.msk.f32.mxu0 %vm59_vm0, %v23_v10  ;;  %891 = vmatprep.mubr.msk.f32.mxu1 %vm59_vm0, %v31_v11  ;;  %v32_v17 = vld [vmem:[%s1584_s1 + $0x68] sm:$0xff]  ;;  %v33_v19 = vld [vmem:[%s1584_s1 + $0x70] sm:$0xff]  ;;  %v34_v21 = vld [vmem:[%s1584_s1 + $0x78] sm:$0xff]  ;;  %s996_s1 = smov [#allocation2]  }
   0xb   :  { %46 = vperm.xlu0 %904, %v36_v14   ;;  %56 = vperm.xlu1 %905, %v38_v15   ;;  %s819_s7 = sshll.u32 %s996_s1, 4  ;;  %s820_s7 = int_to_ptr.vmem [resolvable:$true] %s819_s7 }
   0xc   :  { %s970_s8 = scalar_lea.vmem %s820_s7, 512  ;;  %p975_p1 = scmp.lt.s32.totalorder %s820_s7, %s820_s7 }
   0xd   :  { %880 = vmatmul.mubr.msk.f32.gmra.mrb[4].mxu0 %vm59_vm0, %v24_v16  ;;  %892 = vmatmul.mubr.msk.f32.gmra.mrb[4].mxu1 %vm59_vm0, %v32_v17  ;;  %p971_p0 = scmp.ne.s32.totalorder %s820_s7, %s970_s8  ;;  %p976_p2 = scmp.lt.s32.totalorder %s970_s8, %s970_s8 }
   0xe   :  { %882 = vmatprep.mubr.msk.f32.mxu0 %vm59_vm0, %v25_v18  ;;  %894 = vmatprep.mubr.msk.f32.mxu1 %vm59_vm0, %v33_v19 }
   0xf   :  { %p977_p3 = por %p976_p2, %p975_p1 }
  0x11   :  { %883 = vmatmul.mubr.msk.f32.gmra.mrb[6].mxu0 %vm59_vm0, %v26_v20  ;;  %895 = vmatmul.mubr.msk.f32.gmra.mrb[6].mxu1 %vm59_vm0, %v34_v21  ;;  %p978_p4 = pnand %p977_p3, %p971_p0 }
  0xd8   :  { %v875_v22 = vpop.f32.mrb[0].mxu0  ;;  %v887_v23 = vpop.f32.mrb[0].mxu1 }
  0xd9   :  { %v270_v24 = vmul.f32 0.70710677, %v875_v22  ;;  %v278_v25 = vmul.f32 0.70710677, %v887_v23  ;;  %v174_v26 = vpop.f32.mrb[1].mxu0  ;;  %v214_v27 = vpop.f32.mrb[1].mxu1 }
  0xda   :  { %v269_v30 = vmul.f32 0.70710677, %v174_v26  ;;  %v277_v37 = vmul.f32 0.70710677, %v214_v27  ;;  %v1114_v43 = vmul.f32 0.5, %v875_v22  ;;  %v1116_v44 = vmul.f32 0.5, %v887_v23 }
  0xdb   :  { %v318_v28 = vand.u32 2147483647, %v270_v24  ;;  %v326_v29 = vand.u32 2147483647, %v278_v25  ;;  %vm286_vm1 = vcmp.ge.f32.partialorder %v270_v24, 0.0  ;;  %vm294_vm2 = vcmp.ge.f32.partialorder %v278_v25, 0.0 }
  0xdc   :  { %v878_v31 = vpop.f32.mrb[2].mxu0  ;;  %v317_v36 = vand.u32 2147483647, %v269_v30  ;;  %v890_v41 = vpop.f32.mrb[2].mxu1  ;;  %v1122_v49 = vsel %vm286_vm1, 1.0, %v995_v48  ;;  %v1127_v50 = vsel %vm294_vm2, 1.0, %v995_v48 }
  0xdd   :  { %v334_v32 = vmul.f32 0.3275911, %v318_v28  ;;  %v574_v33 = vsub.f32 0.0, %v318_v28  ;;  %v342_v34 = vmul.f32 0.3275911, %v326_v29  ;;  %v582_v35 = vsub.f32 0.0, %v326_v29 }
  0xde   :  { %v1112_v42 = vpop.f32.mrb[3].mxu0  ;;  %v333_v45 = vmul.f32 0.3275911, %v317_v36  ;;  %v573_v46 = vsub.f32 0.0, %v317_v36  ;;  %v1118_v47 = vpop.f32.mrb[3].mxu1  ;;  %v1129_v51 = vmul.f32 0.5, %v174_v26 }
  0xdf   :  { %v1108_v38 = vadd.f32 1.0, %v334_v32  ;;  %v590_v39 = vmul.f32 %v574_v33, %v318_v28  ;;  %v1110_v40 = vadd.f32 1.0, %v342_v34  ;;  %v598_v53 = vmul.f32 %v582_v35, %v326_v29 }
  0xe0   :  { %v1131_v52 = vpop.f32.mrb[4].mxu0  ;;  %v1134_v54 = vadd.f32 1.0, %v333_v45  ;;  %v325_v55 = vand.u32 2147483647, %v277_v37  ;;  %v1136_v56 = vpop.f32.mrb[4].mxu1  ;;  %vm285_vm3 = vcmp.ge.f32.partialorder %v269_v30, 0.0  ;;  %v589_v61 = vmul.f32 %v573_v46, %v317_v36 }
  0xe1   :  { %906 = vrcp.f32 %v1108_v38  ;;  %v1138_v57 = vpop.f32.mrb[5].mxu0  ;;  %v607_v58 = vmul.f32 1.442695, %v590_v39  ;;  %v272_v59 = vmul.f32 0.70710677, %v878_v31  ;;  %v1140_v60 = vpop.f32.mrb[5].mxu1 }
  0xe2   :  { %908 = vrcp.f32 %v1110_v40  ;;  %v1142_v62 = vmul.f32 0.5, %v214_v27  ;;  %v341_v63 = vmul.f32 0.3275911, %v325_v55  ;;  %v581_v0 = vsub.f32 0.0, %v325_v55 }
  0xe3   :  { %910 = vrcp.f32 %v1134_v54  ;;  %vm293_vm4 = vcmp.ge.f32.partialorder %v277_v37, 0.0  ;;  %v320_v2 = vand.u32 2147483647, %v272_v59  ;;  %v280_v3 = vmul.f32 0.70710677, %v890_v41 }
  0xe4   :  { %v1144_v1 = vpop.f32.mrb[6].mxu0  ;;  %v1147_v4 = vpop.f32.mrb[6].mxu1  ;;  %v623_v5 = vmul.f32 1.442695, %v598_v53  ;;  %v1150_v6 = vsel %vm285_vm3, 1.0, %v995_v48  ;;  %v357_v7 = vadd.f32 1.0, %v341_v63  ;;  %v597_v8 = vmul.f32 %v581_v0, %v325_v55 }
  0xe5   :  { %v1152_v9 = vpop.f32.mrb[7].mxu0  ;;  %v1154_v10 = vpop.f32.mrb[7].mxu1  ;;  %912 = vpow2.f32 %v607_v58  ;;  %v336_v11 = vmul.f32 0.3275911, %v320_v2  ;;  %v576_v12 = vsub.f32 0.0, %v320_v2  ;;  %v1157_v15 = vsel %vm293_vm4, 1.0, %v995_v48 }
  0xe6   :  { %v328_v13 = vand.u32 2147483647, %v280_v3  ;;  %v605_v14 = vmul.f32 1.442695, %v589_v61  ;;  %914 = vrcp.f32 %v357_v7  ;;  %v1159_v16 = vmul.f32 0.5, %v878_v31 }
  0xe7   :  { %v621_v17 = vmul.f32 1.442695, %v597_v8  ;;  %v352_v18 = vadd.f32 1.0, %v336_v11  ;;  %v1161_v19 = vmul.f32 0.5, %v890_v41  ;;  %916 = vpow2.f32 %v623_v5 }
  0xe8   :  { %v344_v20 = vmul.f32 0.3275911, %v328_v13  ;;  %vm288_vm5 = vcmp.ge.f32.partialorder %v272_v59, 0.0  ;;  %vm296_vm6 = vcmp.ge.f32.partialorder %v280_v3, 0.0  ;;  %v271_v21 = vmul.f32 0.70710677, %v1112_v42 }
  0xe9   :  { %918 = vrcp.f32 %v352_v18  ;;  %v592_v23 = vmul.f32 %v576_v12, %v320_v2  ;;  %v1167_v25 = vmul.f32 0.70710677, %v1118_v47  ;;  %v584_v28 = vsub.f32 0.0, %v328_v13 }
  0xea   :  { %v1164_v24 = vadd.f32 1.0, %v344_v20  ;;  %920 = vpow2.f32 %v605_v14  ;;  %v319_v29 = vand.u32 2147483647, %v271_v21  ;;  %v1172_v31 = vsel %vm288_vm5, 1.0, %v995_v48 }
  0xeb   :  { %v907_v22 = vpop.eup %906  ;;  %922 = vpow2.f32 %v621_v17  ;;  %v1175_v32 = vsel %vm296_vm6, 1.0, %v995_v48  ;;  %v1179_v34 = vmul.f32 0.5, %v1112_v42  ;;  %v600_v46 = vmul.f32 %v584_v28, %v328_v13 }
  0xec   :  { %v909_v26 = vpop.eup %908  ;;  %v382_v27 = vmul.f32 %v907_v22, %v1108_v38  ;;  %924 = vrcp.f32 %v1164_v24  ;;  %v335_v35 = vmul.f32 0.3275911, %v319_v29  ;;  %v611_v38 = vmul.f32 1.442695, %v592_v23 }
  0xed   :  { %v390_v30 = vmul.f32 %v909_v26, %v1110_v40  ;;  %v911_v36 = vpop.eup %910  ;;  %v575_v39 = vsub.f32 0.0, %v319_v29  ;;  %v327_v40 = vand.u32 2147483647, %v1167_v25  ;;  %vm287_vm7 = vcmp.ge.f32.partialorder %v271_v21, 0.0 }
  0xee   :  { %v398_v33 = vsub.f32 2.0, %v382_v27  ;;  %v381_v45 = vmul.f32 %v911_v36, %v1134_v54  ;;  %v351_v53 = vadd.f32 1.0, %v335_v35  ;;  %v1190_v42 = vmul.f32 0.5, %v1118_v47 }
  0xef   :  { %v406_v37 = vsub.f32 2.0, %v390_v30  ;;  %v1185_v55 = vpop.eup %912  ;;  %v343_v59 = vmul.f32 0.3275911, %v327_v40  ;;  %vm295_vm8 = vcmp.ge.f32.partialorder %v1167_v25, 0.0  ;;  %v591_v3 = vmul.f32 %v575_v39, %v319_v29 }
  0xf0   :  { %v1182_v41 = vmul.f32 %v907_v22, %v398_v33  ;;  %v915_v61 = vpop.eup %914  ;;  %v397_v0 = vsub.f32 2.0, %v381_v45  ;;  %926 = vrcp.f32 %v351_v53  ;;  %v627_v47 = vmul.f32 1.442695, %v600_v46 }
  0xf1   :  { %v1187_v58 = vmul.f32 %v909_v26, %v406_v37  ;;  %v389_v2 = vmul.f32 %v915_v61, %v357_v7  ;;  %v359_v5 = vadd.f32 1.0, %v343_v59  ;;  %v1195_v8 = vpop.eup %916  ;;  %928 = vpow2.f32 %v611_v38 }
  0xf2   :  { %v430_v63 = vmul.f32 1.0614054, %v1182_v41  ;;  %v1197_v12 = vmul.f32 %v911_v36, %v397_v0  ;;  %v1201_v20 = vsel %vm287_vm7, 1.0, %v995_v48  ;;  %v1208_v27 = vmul.f32 0.70710677, %v1131_v52 }
  0xf3   :  { %v438_v54 = vmul.f32 1.0614054, %v1187_v58  ;;  %v919_v13 = vpop.eup %918  ;;  %v405_v17 = vsub.f32 2.0, %v389_v2  ;;  %930 = vrcp.f32 %v359_v5  ;;  %v609_v21 = vmul.f32 1.442695, %v591_v3 }
  0xf4   :  { %v446_v11 = vadd.f32 -1.4531521, %v430_v63  ;;  %v1203_v22 = vpop.eup %920  ;;  %v429_v23 = vmul.f32 1.0614054, %v1197_v12  ;;  %v384_v26 = vmul.f32 %v919_v13, %v352_v18  ;;  %v583_v33 = vsub.f32 0.0, %v327_v40 }
  0xf5   :  { %v454_v14 = vadd.f32 -1.4531521, %v438_v54  ;;  %v1210_v28 = vpop.eup %922  ;;  %v1213_v30 = vmul.f32 %v915_v61, %v405_v17  ;;  %932 = vpow2.f32 %v627_v47  ;;  %v1220_v46 = vsel %vm295_vm8, 1.0, %v995_v48 }
  0xf6   :  { %v462_v7 = vmul.f32 %v446_v11, %v1182_v41  ;;  %v925_v35 = vpop.eup %924  ;;  %v445_v37 = vadd.f32 -1.4531521, %v429_v23  ;;  %v400_v38 = vsub.f32 2.0, %v384_v26  ;;  %v1227_v0 = vand.u32 2147483647, %v1208_v27 }
  0xf7   :  { %v470_v29 = vmul.f32 %v454_v14, %v1187_v58  ;;  %v437_v45 = vmul.f32 1.0614054, %v1213_v30  ;;  %v392_v18 = vmul.f32 %v925_v35, %v1164_v24  ;;  %v599_v11 = vmul.f32 %v583_v33, %v327_v40 }
  0xf8   :  { %v478_v36 = vadd.f32 1.4214138, %v462_v7  ;;  %v461_v61 = vmul.f32 %v445_v37, %v1197_v12  ;;  %v1224_v63 = vmul.f32 %v919_v13, %v400_v38  ;;  %934 = vpow2.f32 %v609_v21 }
  0xf9   :  { %v486_v39 = vadd.f32 1.4214138, %v470_v29  ;;  %v453_v2 = vadd.f32 -1.4531521, %v437_v45  ;;  %v408_v3 = vsub.f32 2.0, %v392_v18  ;;  %vm290_vm9 = vcmp.ge.f32.partialorder %v1208_v27, 0.0 }
  0xfa   :  { %v494_v59 = vmul.f32 %v478_v36, %v1182_v41  ;;  %v927_v24 = vpop.eup %926  ;;  %v477_v14 = vadd.f32 1.4214138, %v461_v61  ;;  %v432_v25 = vmul.f32 1.0614054, %v1224_v63  ;;  %v338_v40 = vmul.f32 0.3275911, %v1227_v0 }
  0xfb   :  { %v502_v54 = vmul.f32 %v486_v39, %v1187_v58  ;;  %v469_v7 = vmul.f32 %v453_v2, %v1213_v30  ;;  %v1232_v23 = vmul.f32 %v925_v35, %v408_v3  ;;  %v383_v13 = vmul.f32 %v927_v24, %v351_v53  ;;  %v1234_v26 = vpop.eup %928 }
  0xfc   :  { %v510_v47 = vadd.f32 -0.28449672, %v494_v59  ;;  %v493_v36 = vmul.f32 %v477_v14, %v1197_v12  ;;  %v448_v37 = vadd.f32 -1.4531521, %v432_v25 }
  0xfd   :  { %v518_v17 = vadd.f32 -0.28449672, %v502_v54  ;;  %v931_v33 = vpop.eup %930  ;;  %v485_v39 = vadd.f32 1.4214138, %v469_v7  ;;  %v440_v21 = vmul.f32 1.0614054, %v1232_v23 }
  0xfe   :  { %v526_v29 = vmul.f32 %v510_v47, %v1182_v41  ;;  %v399_v45 = vsub.f32 2.0, %v383_v13  ;;  %v509_v35 = vadd.f32 -0.28449672, %v493_v36  ;;  %v464_v53 = vmul.f32 %v448_v37, %v1224_v63 }
  0xff   :  { %v534_v38 = vmul.f32 %v518_v17, %v1187_v58  ;;  %v391_v59 = vmul.f32 %v931_v33, %v359_v5  ;;  %v501_v54 = vmul.f32 %v485_v39, %v1213_v30  ;;  %v456_v2 = vadd.f32 -1.4531521, %v440_v21  ;;  %v1245_v47 = vpop.eup %932 }
 0x100   :  { %v542_v18 = vadd.f32 0.2548296, %v526_v29  ;;  %v1243_v3 = vmul.f32 %v927_v24, %v399_v45  ;;  %v525_v25 = vmul.f32 %v509_v35, %v1197_v12  ;;  %v480_v17 = vadd.f32 1.4214138, %v464_v53 }
 0x101   :  { %v550_v61 = vadd.f32 0.2548296, %v534_v38  ;;  %v407_v7 = vsub.f32 2.0, %v391_v59  ;;  %v517_v29 = vadd.f32 -0.28449672, %v501_v54  ;;  %v472_v36 = vmul.f32 %v456_v2, %v1232_v23 }
 0x102   :  { %v558_v14 = vmul.f32 %v542_v18, %v1182_v41  ;;  %v431_v5 = vmul.f32 1.0614054, %v1243_v3  ;;  %v541_v38 = vadd.f32 0.2548296, %v525_v25  ;;  %v496_v24 = vmul.f32 %v480_v17, %v1224_v63  ;;  %v1258_v35 = vpop.eup %934 }
 0x103   :  { %v566_v13 = vmul.f32 %v550_v61, %v1187_v58  ;;  %v1254_v39 = vmul.f32 %v931_v33, %v407_v7  ;;  %v533_v21 = vmul.f32 %v517_v29, %v1213_v30  ;;  %v488_v45 = vadd.f32 1.4214138, %v472_v36 }
 0x104   :  { %v638_v37 = vmul.f32 %v1185_v55, %v558_v14  ;;  %v447_v18 = vadd.f32 -1.4531521, %v431_v5  ;;  %v557_v53 = vmul.f32 %v541_v38, %v1197_v12  ;;  %v512_v59 = vadd.f32 -0.28449672, %v496_v24 }
 0x105   :  { %v646_v41 = vmul.f32 %v1195_v8, %v566_v13  ;;  %v439_v61 = vmul.f32 1.0614054, %v1254_v39  ;;  %v549_v55 = vadd.f32 0.2548296, %v533_v21  ;;  %v504_v54 = vmul.f32 %v488_v45, %v1232_v23 }
 0x106   :  { %v654_v58 = vsub.f32 1.0, %v638_v37  ;;  %v463_v33 = vmul.f32 %v447_v18, %v1243_v3  ;;  %v625_v2 = vmul.f32 1.442695, %v599_v11  ;;  %v637_v8 = vmul.f32 %v1203_v22, %v557_v53 }
 0x107   :  { %v662_v14 = vsub.f32 1.0, %v646_v41  ;;  %v528_v25 = vmul.f32 %v512_v59, %v1224_v63  ;;  %v455_v17 = vadd.f32 -1.4531521, %v439_v61  ;;  %v565_v7 = vmul.f32 %v549_v55, %v1213_v30 }
 0x108   :  { %v520_v13 = vadd.f32 -0.28449672, %v504_v54  ;;  %v479_v29 = vadd.f32 1.4214138, %v463_v33  ;;  %v670_v12 = vmul.f32 %v654_v58, %v1122_v49  ;;  %v354_v37 = vadd.f32 1.0, %v338_v40 }
 0x109   :  { %v544_v36 = vadd.f32 0.2548296, %v528_v25  ;;  %v471_v5 = vmul.f32 %v455_v17, %v1254_v39  ;;  %v653_v38 = vsub.f32 1.0, %v637_v8  ;;  %v645_v11 = vmul.f32 %v1210_v28, %v565_v7 }
 0x10a   :  { %v536_v22 = vmul.f32 %v520_v13, %v1232_v23  ;;  %v495_v24 = vmul.f32 %v479_v29, %v1243_v3  ;;  %v678_v41 = vmul.f32 %v662_v14, %v1127_v50  ;;  %v282_v45 = vmul.f32 0.70710677, %v1136_v56 }
 0x10b   :  { %v560_v30 = vmul.f32 %v544_v36, %v1224_v63  ;;  %v487_v21 = vadd.f32 1.4214138, %v471_v5  ;;  %v661_v18 = vsub.f32 1.0, %v645_v11  ;;  %936 = vpow2.f32 %v625_v2 }
 0x10c   :  { %v552_v49 = vadd.f32 0.2548296, %v536_v22  ;;  %v511_v58 = vadd.f32 -0.28449672, %v495_v24  ;;  %v686_v53 = vadd.f32 1.0, %v670_v12  ;;  %938 = vrcp.f32 %v354_v37 }
 0x10d   :  { %v640_v40 = vmul.f32 %v1234_v26, %v560_v30  ;;  %v503_v28 = vmul.f32 %v487_v21, %v1254_v39  ;;  %v669_v59 = vmul.f32 %v653_v38, %v1150_v6  ;;  %v578_v63 = vsub.f32 0.0, %v1227_v0 }
 0x10e   :  { %v568_v61 = vmul.f32 %v552_v49, %v1232_v23  ;;  %v527_v50 = vmul.f32 %v511_v58, %v1243_v3  ;;  %v694_v55 = vadd.f32 1.0, %v678_v41  ;;  %v1283_v33 = vmul.f32 0.5, %v1131_v52 }
 0x10f   :  { %v519_v54 = vadd.f32 -0.28449672, %v503_v28  ;;  %v1288_v26 = vsel %vm290_vm9, 1.0, %v995_v48  ;;  %v677_v2 = vmul.f32 %v661_v18, %v1157_v15  ;;  %v656_v14 = vsub.f32 1.0, %v640_v40 }
 0x110   :  { %v648_v6 = vmul.f32 %v1245_v47, %v568_v61  ;;  %v543_v23 = vadd.f32 0.2548296, %v527_v50  ;;  %v594_v25 = vmul.f32 %v578_v63, %v1227_v0  ;;  %v1295_v17 = vmul.f32 0.5, %v1136_v56 }
 0x111   :  { %v535_v8 = vmul.f32 %v519_v54, %v1254_v39  ;;  %v330_v52 = vand.u32 2147483647, %v282_v45  ;;  %v1298_v7 = vmul.f32 %v686_v53, %v1114_v43  ;;  %v685_v27 = vadd.f32 1.0, %v669_v59 }
 0x112   :  { %v664_v13 = vsub.f32 1.0, %v648_v6  ;;  %v559_v29 = vmul.f32 %v543_v23, %v1243_v3  ;;  %v1302_v15 = vmul.f32 %v694_v55, %v1116_v44  ;;  %v693_v5 = vadd.f32 1.0, %v677_v2 }
 0x113   :  { %v551_v47 = vadd.f32 0.2548296, %v535_v8  ;;  %v346_v12 = vmul.f32 0.3275911, %v330_v52  ;;  %v586_v36 = vsub.f32 0.0, %v330_v52  ;;  %v672_v0 = vmul.f32 %v656_v14, %v1172_v31 }
 0x114   :  { %v639_v56 = vmul.f32 %v1258_v35, %v559_v29  ;;  %vm298_vm10 = vcmp.ge.f32.partialorder %v282_v45, 0.0  ;;  %v615_v43 = vmul.f32 1.442695, %v594_v25  ;;  %v1308_v3 = vmul.f32 %v685_v27, %v1129_v51 }
 0x115   :  { %v567_v38 = vmul.f32 %v551_v47, %v1254_v39  ;;  %v362_v11 = vadd.f32 1.0, %v346_v12  ;;  %v602_v22 = vmul.f32 %v586_v36, %v330_v52  ;;  %v937_v24 = vpop.eup %936  ;;  %v680_v44 = vmul.f32 %v664_v13, %v1175_v32 }
 0x116   :  { %v655_v41 = vsub.f32 1.0, %v639_v56  ;;  %v273_v30 = vmul.f32 0.70710677, %v1138_v57  ;;  %v939_v21 = vpop.eup %938  ;;  %v281_v35 = vmul.f32 0.70710677, %v1140_v60  ;;  %v1314_v39 = vmul.f32 %v693_v5, %v1142_v62 }
 0x117   :  { %v647_v18 = vmul.f32 %v937_v24, %v567_v38  ;;  %940 = vrcp.f32 %v362_v11  ;;  %v631_v31 = vmul.f32 1.442695, %v602_v22  ;;  %v688_v49 = vadd.f32 1.0, %v672_v0 }
 0x118   :  { %v386_v58 = vmul.f32 %v939_v21, %v354_v37  ;;  %v1318_v51 = vsel %vm298_vm10, 1.0, %v995_v48  ;;  %v671_v32 = vmul.f32 %v655_v41, %v1201_v20  ;;  %942 = vpow2.f32 %v615_v43 }
 0x119   :  { %v663_v53 = vsub.f32 1.0, %v647_v18  ;;  %v321_v40 = vand.u32 2147483647, %v273_v30  ;;  %v696_v28 = vadd.f32 1.0, %v680_v44  ;;  %v1322_v61 = vmul.f32 0.5, %v1138_v57 }
 0x11a   :  { %v402_v59 = vsub.f32 2.0, %v386_v58  ;;  %v329_v50 = vand.u32 2147483647, %v281_v35  ;;  %944 = vpow2.f32 %v631_v31  ;;  %vm289_vm11 = vcmp.ge.f32.partialorder %v273_v30, 0.0 }
 0x11b   :  { %v337_v62 = vmul.f32 0.3275911, %v321_v40  ;;  %v577_v63 = vsub.f32 0.0, %v321_v40  ;;  %v679_v37 = vmul.f32 %v663_v53, %v1220_v46  ;;  %v687_v20 = vadd.f32 1.0, %v671_v32 }
 0x11c   :  { %v1325_v45 = vmul.f32 %v939_v21, %v402_v59  ;;  %v345_v55 = vmul.f32 0.3275911, %v329_v50  ;;  %v585_v54 = vsub.f32 0.0, %v329_v50  ;;  %vm297_vm12 = vcmp.ge.f32.partialorder %v281_v35, 0.0 }
 0x11d   :  { %v353_v2 = vadd.f32 1.0, %v337_v62  ;;  %v593_v14 = vmul.f32 %v577_v63, %v321_v40  ;;  %v1329_v8 = vmul.f32 0.70710677, %v1144_v1  ;;  %v1332_v25 = vmul.f32 %v688_v49, %v1159_v16 }
 0x11e   :  { %v434_v6 = vmul.f32 1.0614054, %v1325_v45  ;;  %v361_v23 = vadd.f32 1.0, %v345_v55  ;;  %v601_v57 = vmul.f32 %v585_v54, %v329_v50  ;;  %v1335_v46 = vmul.f32 %v696_v28, %v1161_v19 }
 0x11f   :  { %946 = vrcp.f32 %v353_v2  ;;  %v1338_v52 = vmul.f32 0.5, %v1140_v60  ;;  %v695_v27 = vadd.f32 1.0, %v679_v37  ;;  %v1342_v29 = vsel %vm289_vm11, 1.0, %v995_v48 }
 0x120   :  { %v450_v13 = vadd.f32 -1.4531521, %v434_v6  ;;  %948 = vrcp.f32 %v361_v23  ;;  %v1345_v12 = vmul.f32 %v687_v20, %v1179_v34  ;;  %v1348_v16 = vsel %vm297_vm12, 1.0, %v995_v48 }
 0x121   :  { %v941_v47 = vpop.eup %940  ;;  %v324_v19 = vand.u32 2147483647, %v1329_v8  ;;  %v284_v36 = vmul.f32 0.70710677, %v1147_v4  ;;  %v613_v0 = vmul.f32 1.442695, %v593_v14  ;;  %v1357_v44 = vmul.f32 %v695_v27, %v1190_v42 }
 0x122   :  { %v466_v60 = vmul.f32 %v450_v13, %v1325_v45  ;;  %v394_v5 = vmul.f32 %v941_v47, %v362_v11  ;;  %v629_v56 = vmul.f32 1.442695, %v601_v57  ;;  %v943_v38 = vpop.eup %942  ;;  %v1354_v43 = vmul.f32 0.5, %v1144_v1 }
 0x123   :  { %v340_v22 = vmul.f32 0.3275911, %v324_v19  ;;  %v580_v24 = vsub.f32 0.0, %v324_v19  ;;  %v332_v34 = vand.u32 2147483647, %v284_v36  ;;  %v1363_v11 = vmul.f32 0.5, %v1147_v4 }
 0x124   :  { %v482_v41 = vadd.f32 1.4214138, %v466_v60  ;;  %v410_v30 = vsub.f32 2.0, %v394_v5  ;;  %v275_v21 = vmul.f32 0.70710677, %v1152_v9  ;;  %v1360_v18 = vpop.eup %944  ;;  %950 = vpow2.f32 %v613_v0 }
 0x125   :  { %v356_v31 = vadd.f32 1.0, %v340_v22  ;;  %v348_v35 = vmul.f32 0.3275911, %v332_v34  ;;  %v588_v49 = vsub.f32 0.0, %v332_v34  ;;  %vm292_vm13 = vcmp.ge.f32.partialorder %v1329_v8, 0.0 }
 0x126   :  { %v498_v1 = vmul.f32 %v482_v41, %v1325_v45  ;;  %v1366_v58 = vmul.f32 %v941_v47, %v410_v30  ;;  %v323_v32 = vand.u32 2147483647, %v275_v21  ;;  %v596_v42 = vmul.f32 %v580_v24, %v324_v19 }
 0x127   :  { %952 = vrcp.f32 %v356_v31  ;;  %v364_v53 = vadd.f32 1.0, %v348_v35  ;;  %vm300_vm14 = vcmp.ge.f32.partialorder %v284_v36, 0.0  ;;  %v604_v50 = vmul.f32 %v588_v49, %v332_v34  ;;  %v1401_v36 = vpop.permute.xlu0 %41 }
 0x128   :  { %v514_v40 = vadd.f32 -0.28449672, %v498_v1  ;;  %v442_v28 = vmul.f32 1.0614054, %v1366_v58  ;;  %954 = vpow2.f32 %v629_v56  ;;  %v579_v59 = vsub.f32 0.0, %v323_v32 }
 0x129   :  { %v947_v4 = vpop.eup %946  ;;  %vm291_vm15 = vcmp.ge.f32.partialorder %v275_v21, 0.0  ;;  %v339_v62 = vmul.f32 0.3275911, %v323_v32  ;;  %956 = vrcp.f32 %v364_v53  ;;  %v619_v14 = vmul.f32 1.442695, %v596_v42 }
 0x12a   :  { %v949_v63 = vpop.eup %948  ;;  %v530_v37 = vmul.f32 %v514_v40, %v1325_v45  ;;  %v458_v55 = vadd.f32 -1.4531521, %v442_v28  ;;  %v385_v54 = vmul.f32 %v947_v4, %v353_v2  ;;  %v595_v57 = vmul.f32 %v579_v59, %v323_v32 }
 0x12b   :  { %v393_v20 = vmul.f32 %v949_v63, %v361_v23  ;;  %v1371_v6 = vadd.f32 1.0, %v339_v62  ;;  %v1375_v19 = vmul.f32 0.70710677, %v1154_v10  ;;  %v1380_v5 = vsel %vm292_vm13, 1.0, %v995_v48 }
 0x12c   :  { %v546_v27 = vadd.f32 0.2548296, %v530_v37  ;;  %v474_v13 = vmul.f32 %v458_v55, %v1366_v58  ;;  %v401_v47 = vsub.f32 2.0, %v385_v54  ;;  %v635_v2 = vmul.f32 1.442695, %v604_v50 }
 0x12d   :  { %v409_v60 = vsub.f32 2.0, %v393_v20  ;;  %958 = vrcp.f32 %v1371_v6  ;;  %v1388_v22 = vsel %vm300_vm14, 1.0, %v995_v48  ;;  %v1394_v34 = vsel %vm291_vm15, 1.0, %v995_v48 }
 0x12e   :  { %v562_v23 = vmul.f32 %v546_v27, %v1325_v45  ;;  %v490_v0 = vadd.f32 1.4214138, %v474_v13  ;;  %v1384_v56 = vmul.f32 %v947_v4, %v401_v47  ;;  %v617_v8 = vmul.f32 1.442695, %v595_v57  ;;  %v1397_v30 = vpop.eup %950 }
 0x12f   :  { %v1390_v24 = vmul.f32 %v949_v63, %v409_v60  ;;  %v331_v41 = vand.u32 2147483647, %v1375_v19  ;;  %960 = vpow2.f32 %v619_v14  ;;  %v1412_v13 = vmul.f32 %v1308_v3, %v1401_v36 }
 0x130   :  { %v642_v35 = vmul.f32 %v943_v38, %v562_v23  ;;  %v506_v45 = vmul.f32 %v490_v0, %v1366_v58  ;;  %v433_v49 = vmul.f32 1.0614054, %v1384_v56  ;;  %962 = vpow2.f32 %v635_v2  ;;  %v47_v23 = vpop.permute.xlu0 %46 }
 0x131   :  { %v953_v1 = vpop.eup %952  ;;  %v441_v32 = vmul.f32 1.0614054, %v1390_v24  ;;  %v347_v21 = vmul.f32 0.3275911, %v331_v41  ;;  %v587_v42 = vsub.f32 0.0, %v331_v41  ;;  %964 = vpow2.f32 %v617_v8 }
 0x132   :  { %v1404_v40 = vpop.eup %954  ;;  %v658_v28 = vsub.f32 1.0, %v642_v35  ;;  %v522_v59 = vadd.f32 -0.28449672, %v506_v45  ;;  %v449_v4 = vadd.f32 -1.4531521, %v433_v49  ;;  %v388_v50 = vmul.f32 %v953_v1, %v356_v31 }
 0x133   :  { %v457_v38 = vadd.f32 -1.4531521, %v441_v32  ;;  %v363_v62 = vadd.f32 1.0, %v347_v21  ;;  %v603_v63 = vmul.f32 %v587_v42, %v331_v41  ;;  %v957_v37 = vpop.eup %956  ;;  %v1418_v35 = vmul.f32 %v1314_v39, %v1401_v36 }
 0x134   :  { %v674_v55 = vmul.f32 %v658_v28, %v1288_v26  ;;  %v538_v54 = vmul.f32 %v522_v59, %v1366_v58  ;;  %v465_v20 = vmul.f32 %v449_v4, %v1384_v56  ;;  %v404_v14 = vsub.f32 2.0, %v388_v50 }
 0x135   :  { %v473_v57 = vmul.f32 %v457_v38, %v1390_v24  ;;  %v396_v27 = vmul.f32 %v957_v37, %v364_v53  ;;  %966 = vrcp.f32 %v363_v62  ;;  %v633_v41 = vmul.f32 1.442695, %v603_v63 }
 0x136   :  { %v690_v31 = vadd.f32 1.0, %v674_v55  ;;  %v554_v47 = vadd.f32 0.2548296, %v538_v54  ;;  %v481_v60 = vadd.f32 1.4214138, %v465_v20  ;;  %v1414_v2 = vmul.f32 %v953_v1, %v404_v14 }
 0x137   :  { %v959_v26 = vpop.eup %958  ;;  %v489_v0 = vadd.f32 1.4214138, %v473_v57  ;;  %v412_v8 = vsub.f32 2.0, %v396_v27  ;;  %v718_v28 = vmul.f32 %v1298_v7, %v47_v23  ;;  %968 = vpow2.f32 %v633_v41 }
 0x138   :  { %v1421_v53 = vmul.f32 %v690_v31, %v1283_v33  ;;  %v570_v45 = vmul.f32 %v554_v47, %v1366_v58  ;;  %v497_v49 = vmul.f32 %v481_v60, %v1384_v56  ;;  %v436_v32 = vmul.f32 1.0614054, %v1414_v2 }
 0x139   :  { %v505_v1 = vmul.f32 %v489_v0, %v1390_v24  ;;  %v1427_v21 = vmul.f32 %v957_v37, %v412_v8  ;;  %v387_v42 = vmul.f32 %v959_v26, %v1371_v6  ;;  %v1431_v59 = vpop.eup %960  ;;  %v746_v37 = vmul.f32 %v1302_v15, %v47_v23 }
 0x13a   :  { %v650_v4 = vmul.f32 %v1360_v18, %v570_v45  ;;  %v513_v33 = vadd.f32 -0.28449672, %v497_v49  ;;  %v452_v50 = vadd.f32 -1.4531521, %v436_v32  ;;  %v726_v58 = vmul.f32 %v1421_v53, %v47_v23  ;;  %v1435_v38 = vpop.eup %962 }
 0x13b   :  { %v521_v63 = vadd.f32 -0.28449672, %v505_v1  ;;  %v444_v55 = vmul.f32 1.0614054, %v1427_v21  ;;  %v403_v54 = vsub.f32 2.0, %v387_v42  ;;  %v1441_v27 = vpop.eup %964  ;;  %vm299_vm0 = vcmp.ge.f32.partialorder %v1375_v19, 0.0 }
 0x13c   :  { %v666_v20 = vsub.f32 1.0, %v650_v4  ;;  %v529_v6 = vmul.f32 %v513_v33, %v1384_v56  ;;  %v468_v14 = vmul.f32 %v452_v50, %v1414_v2  ;;  %v730_v57 = vmax.f32 %v718_v28, %v726_v58 }
 0x13d   :  { %v537_v18 = vmul.f32 %v521_v63, %v1390_v24  ;;  %v460_v31 = vadd.f32 -1.4531521, %v444_v55  ;;  %v1444_v47 = vmul.f32 %v959_v26, %v403_v54  ;;  %v734_v28 = vadd.f32 %v1421_v53, %v1298_v7 }
 0x13e   :  { %v682_v60 = vmul.f32 %v666_v20, %v1318_v51  ;;  %v545_v0 = vadd.f32 0.2548296, %v529_v6  ;;  %v484_v8 = vadd.f32 1.4214138, %v468_v14  ;;  %v750_v45 = vmax.f32 %v730_v57, %v746_v37 }
 0x13f   :  { %v967_v49 = vpop.eup %966  ;;  %v553_v32 = vadd.f32 0.2548296, %v537_v18  ;;  %v476_v1 = vmul.f32 %v460_v31, %v1427_v21  ;;  %v435_v42 = vmul.f32 1.0614054, %v1444_v47  ;;  %v754_v63 = vadd.f32 %v734_v28, %v1302_v15 }
 0x140   :  { %v698_v4 = vadd.f32 1.0, %v682_v60  ;;  %v561_v33 = vmul.f32 %v545_v0, %v1384_v56  ;;  %v500_v26 = vmul.f32 %v484_v8, %v1414_v2  ;;  %v395_v41 = vmul.f32 %v967_v49, %v363_v62 }
 0x141   :  { %v569_v51 = vmul.f32 %v553_v32, %v1390_v24  ;;  %v492_v50 = vadd.f32 1.4214138, %v476_v1  ;;  %v451_v58 = vadd.f32 -1.4531521, %v435_v42  ;;  %v721_v24 = vmul.f32 %v1308_v3, %v1308_v3  ;;  %v1471_v42 = vpop.eup %968 }
 0x142   :  { %v1456_v55 = vmul.f32 %v698_v4, %v1295_v17  ;;  %v641_v54 = vmul.f32 %v1397_v30, %v561_v33  ;;  %v516_v37 = vadd.f32 -0.28449672, %v500_v26  ;;  %v411_v20 = vsub.f32 2.0, %v395_v41 }
 0x143   :  { %v649_v6 = vmul.f32 %v1404_v40, %v569_v51  ;;  %v508_v56 = vmul.f32 %v492_v50, %v1427_v21  ;;  %v467_v14 = vmul.f32 %v451_v58, %v1444_v47 }
 0x144   :  { %v657_v62 = vsub.f32 1.0, %v641_v54  ;;  %v532_v57 = vmul.f32 %v516_v37, %v1414_v2  ;;  %v1465_v18 = vmul.f32 %v967_v49, %v411_v20  ;;  %v766_v17 = vmul.f32 %v1456_v55, %v47_v23 }
 0x145   :  { %v665_v31 = vsub.f32 1.0, %v649_v6  ;;  %v524_v30 = vadd.f32 -0.28449672, %v508_v56  ;;  %v483_v60 = vadd.f32 1.4214138, %v467_v14  ;;  %v774_v0 = vadd.f32 %v754_v63, %v1456_v55  ;;  %v1491_v6 = vpop.permute.xlu1 %51 }
 0x146   :  { %v673_v40 = vmul.f32 %v657_v62, %v1342_v29  ;;  %v548_v8 = vadd.f32 0.2548296, %v532_v57  ;;  %v443_v32 = vmul.f32 1.0614054, %v1465_v18  ;;  %v770_v1 = vmax.f32 %v750_v45, %v766_v17 }
 0x147   :  { %v681_v28 = vmul.f32 %v665_v31, %v1348_v16  ;;  %v540_v49 = vmul.f32 %v524_v30, %v1427_v21  ;;  %v499_v4 = vmul.f32 %v483_v60, %v1444_v47  ;;  %791 = vadd.xlane.f32.xlu1 %v774_v0  ;;  %v757_v23 = vmul.f32 %v1314_v39, %v1314_v39 }
 0x148   :  { %v689_v33 = vadd.f32 1.0, %v673_v40  ;;  %v564_v26 = vmul.f32 %v548_v8, %v1414_v2  ;;  %v459_v29 = vadd.f32 -1.4531521, %v443_v32  ;;  %786 = vst [vmem:[#allocation2 + $0x8] sm:$0xff] %v770_v1  ;;  %v722_v45 = vmul.f32 %v1298_v7, %v1298_v7 }
 0x149   :  { %v697_v41 = vadd.f32 1.0, %v681_v28  ;;  %v556_v51 = vadd.f32 0.2548296, %v540_v49  ;;  %v515_v50 = vadd.f32 -0.28449672, %v499_v4  ;;  %v738_v16 = vmul.f32 %v1421_v53, %v1421_v53  ;;  %v57_v28 = vpop.permute.xlu1 %56 }
 0x14a   :  { %v705_v58 = vmul.f32 %v689_v33, %v1322_v61  ;;  %v644_v63 = vmul.f32 %v1431_v59, %v564_v26  ;;  %v475_v54 = vmul.f32 %v459_v29, %v1465_v18  ;;  %v758_v2 = vmul.f32 %v1302_v15, %v1302_v15 }
 0x14b   :  { %v713_v37 = vmul.f32 %v697_v41, %v1338_v52  ;;  %v572_v20 = vmul.f32 %v556_v51, %v1427_v21  ;;  %v531_v7 = vmul.f32 %v515_v50, %v1444_v47  ;;  %v742_v56 = vadd.f32 %v738_v16, %v722_v45 }
 0x14c   :  { %v660_v14 = vsub.f32 1.0, %v644_v63  ;;  %v491_v53 = vadd.f32 1.4214138, %v475_v54  ;;  %v725_v61 = vmul.f32 %v705_v58, %v1401_v36  ;;  %v733_v59 = vadd.f32 %v705_v58, %v1308_v3 }
 0x14d   :  { %v652_v62 = vmul.f32 %v1435_v38, %v572_v20  ;;  %v547_v57 = vadd.f32 0.2548296, %v531_v7  ;;  %v765_v15 = vmul.f32 %v713_v37, %v1401_v36  ;;  %v737_v17 = vmul.f32 %v705_v58, %v705_v58 }
 0x14e   :  { %v676_v52 = vmul.f32 %v660_v14, %v1380_v5  ;;  %v507_v21 = vmul.f32 %v491_v53, %v1465_v18  ;;  %v729_v31 = vmax.f32 %v1412_v13, %v725_v61  ;;  %v753_v30 = vadd.f32 %v733_v59, %v1314_v39 }
 0x14f   :  { %v668_v60 = vsub.f32 1.0, %v652_v62  ;;  %v563_v0 = vmul.f32 %v547_v57, %v1444_v47  ;;  %v741_v40 = vadd.f32 %v737_v17, %v721_v24  ;;  %v777_v8 = vmul.f32 %v713_v37, %v713_v37 }
 0x150   :  { %v692_v3 = vadd.f32 1.0, %v676_v52  ;;  %v523_v32 = vadd.f32 -0.28449672, %v507_v21  ;;  %v749_v38 = vmax.f32 %v729_v31, %v1418_v35  ;;  %v773_v1 = vadd.f32 %v753_v30, %v713_v37 }
 0x151   :  { %v684_v36 = vmul.f32 %v668_v60, %v1388_v22  ;;  %v643_v5 = vmul.f32 %v1441_v27, %v563_v0  ;;  %v761_v49 = vadd.f32 %v757_v23, %v741_v40  ;;  %v762_v4 = vadd.f32 %v758_v2, %v742_v56 }
 0x152   :  { %v708_v13 = vmul.f32 %v692_v3, %v1354_v43  ;;  %v539_v39 = vmul.f32 %v523_v32, %v1465_v18  ;;  %v769_v33 = vmax.f32 %v749_v38, %v765_v15  ;;  %789 = vadd.xlane.f32.xlu0 %v773_v1  ;;  %v778_v47 = vmul.f32 %v1456_v55, %v1456_v55 }
 0x153   :  { %v700_v24 = vadd.f32 1.0, %v684_v36  ;;  %v659_v26 = vsub.f32 1.0, %v643_v5  ;;  %v781_v35 = vadd.f32 %v777_v8, %v761_v49  ;;  %v720_v27 = vmul.f32 %v1332_v25, %v57_v28 }
 0x154   :  { %v555_v22 = vadd.f32 0.2548296, %v539_v39  ;;  %785 = vst [vmem:[#allocation2] sm:$0xff] %v769_v33  ;;  %v728_v23 = vmul.f32 %v708_v13, %v57_v28  ;;  %v782_v29 = vadd.f32 %v778_v47, %v762_v4  ;;  %v748_v41 = vmul.f32 %v1335_v46, %v57_v28 }
 0x155   :  { %v716_v43 = vmul.f32 %v700_v24, %v1363_v11  ;;  %v675_v45 = vmul.f32 %v659_v26, %v1394_v34  ;;  %802 = vadd.xlane.f32.xlu1 %v781_v35  ;;  %v736_v55 = vadd.f32 %v708_v13, %v1332_v25  ;;  %v724_v16 = vmul.f32 %v1332_v25, %v1332_v25 }
 0x156   :  { %v571_v51 = vmul.f32 %v555_v22, %v1465_v18  ;;  %v732_v50 = vmax.f32 %v720_v27, %v728_v23  ;;  %804 = vadd.xlane.f32.xlu0 %v782_v29  ;;  %v740_v58 = vmul.f32 %v708_v13, %v708_v13  ;;  %v259_v63 = vmul.f32 0.5, %v1152_v9 }
 0x157   :  { %v691_v54 = vadd.f32 1.0, %v675_v45  ;;  %v756_v11 = vadd.f32 %v736_v55, %v1335_v46  ;;  %v760_v34 = vmul.f32 %v1335_v46, %v1335_v46  ;;  %v768_v20 = vmul.f32 %v716_v43, %v57_v28 }
 0x158   :  { %v651_v2 = vmul.f32 %v1471_v42, %v571_v51  ;;  %v752_v37 = vmax.f32 %v732_v50, %v748_v41  ;;  %v744_v7 = vadd.f32 %v740_v58, %v724_v16  ;;  %v315_v56 = vsel %vm299_vm0, 1.0, %v995_v48 }
 0x159   :  { %v707_v18 = vmul.f32 %v691_v54, %v259_v63  ;;  %v719_v25 = vmul.f32 %v1345_v12, %v1491_v6  ;;  %v776_v9 = vadd.f32 %v756_v11, %v716_v43  ;;  %v780_v59 = vmul.f32 %v716_v43, %v716_v43 }
 0x15a   :  { %v667_v14 = vsub.f32 1.0, %v651_v2  ;;  %v772_v53 = vmax.f32 %v752_v37, %v768_v20  ;;  %v764_v61 = vadd.f32 %v760_v34, %v744_v7  ;;  %v723_v42 = vmul.f32 %v1345_v12, %v1345_v12 }
 0x15b   :  { %v739_v62 = vmul.f32 %v707_v18, %v707_v18  ;;  %v727_v46 = vmul.f32 %v707_v18, %v1491_v6  ;;  %795 = vadd.xlane.f32.xlu0 %v776_v9  ;;  %v735_v57 = vadd.f32 %v707_v18, %v1345_v12  ;;  %v747_v48 = vmul.f32 %v1357_v44, %v1491_v6 }
 0x15c   :  { %v683_v15 = vmul.f32 %v667_v14, %v315_v56  ;;  %788 = vst [vmem:[#allocation2 + $0x18] sm:$0xff] %v772_v53  ;;  %v784_v19 = vadd.f32 %v780_v59, %v764_v61  ;;  %v759_v21 = vmul.f32 %v1357_v44, %v1357_v44  ;;  %v267_v30 = vmul.f32 0.5, %v1154_v10 }
 0x15d   :  { %v731_v17 = vmax.f32 %v719_v25, %v727_v46  ;;  %v743_v52 = vadd.f32 %v739_v62, %v723_v42  ;;  %v755_v31 = vadd.f32 %v735_v57, %v1357_v44 }
 0x15e   :  { %v699_v60 = vadd.f32 1.0, %v683_v15 }
 0x15f   :  { %v751_v0 = vmax.f32 %v731_v17, %v747_v48  ;;  %v763_v40 = vadd.f32 %v759_v21, %v743_v52 }
 0x160   :  { %v715_v8 = vmul.f32 %v699_v60, %v267_v30 }
 0x162   :  { %v767_v12 = vmul.f32 %v715_v8, %v1491_v6  ;;  %v779_v3 = vmul.f32 %v715_v8, %v715_v8  ;;  %v775_v32 = vadd.f32 %v755_v31, %v715_v8 }
 0x164   :  { %v771_v38 = vmax.f32 %v751_v0, %v767_v12  ;;  %v783_v1 = vadd.f32 %v779_v3, %v763_v40  ;;  %793 = vadd.xlane.f32.xlu0 %v775_v32 }
 0x166   :  { %787 = vst [vmem:[#allocation2 + $0x10] sm:$0xff] %v771_v38  ;;  %806 = vadd.xlane.f32.xlu1 %v783_v1 }
 0x168   :  { %808 = vadd.xlane.f32.xlu0 %v784_v19 }
 0x169   :  { %981 = shalt.err (!%p978_p4)
}
 0x16a   :  { %s982_s11 = scalar_lea.hbm %s1586_s3, 512 }
 0x16b   :  { %p983_p5 = scmp.ne.s32.totalorder %s1586_s3, %s982_s11  ;;  %p986_p6 = scmp.lt.u32.totalorder %s982_s11, %s1586_s3 }
 0x16d   :  { %p988_p7 = pnand %p986_p6, %p983_p5 }
 0x16f   :  { %991 = shalt.err (!%p988_p7)
}
 0x170   :  { %s997_s16 = smov 128   ;;  %s998_s17 = smov 8   ;;  %vm797_vm1 = vcmask 7168  }
 0x171   :  { %825 = dma.vmem_to_hbm [thread:$0]  %s820_s7, 512, %s1586_s3, [#allocation3], %s997_s16, %s997_s16, %s998_s17  }
 0x1d4   :  { %v792_v10 = vpop.xlane.xlu1 %791 }
 0x1d5   :  { %799 = vst.msk [vmem:[%s1587_s4 + $0x8] sm:$0xff] %vm797_vm1, %v792_v10 }
 0x1df   :  { %v790_v44 = vpop.xlane.xlu0 %789 }
 0x1e0   :  { %798 = vst.msk [vmem:[%s1587_s4] sm:$0xff] %vm797_vm1, %v790_v44 }
 0x1e2   :  { %v803_v6 = vpop.xlane.xlu1 %802 }
 0x1e3   :  { %810 = vst.msk [vmem:[%s1588_s5] sm:$0xff] %vm797_vm1, %v803_v6  ;;  %v805_v36 = vpop.xlane.xlu0 %804 }
 0x1e4   :  { %811 = vst.msk [vmem:[%s1588_s5 + $0x8] sm:$0xff] %vm797_vm1, %v805_v36 }
 0x1e8   :  { %v796_v5 = vpop.xlane.xlu0 %795 }
 0x1e9   :  { %801 = vst.msk [vmem:[%s1587_s4 + $0x18] sm:$0xff] %vm797_vm1, %v796_v5 }
 0x1f1   :  { %v794_v28 = vpop.xlane.xlu0 %793 }
 0x1f2   :  { %800 = vst.msk [vmem:[%s1587_s4 + $0x10] sm:$0xff] %vm797_vm1, %v794_v28 }
 0x1f3   :  { %v807_v49 = vpop.xlane.xlu1 %806 }
 0x1f4   :  { %812 = vst.msk [vmem:[%s1588_s5 + $0x10] sm:$0xff] %vm797_vm1, %v807_v49 }
 0x1f5   :  { %v809_v4 = vpop.xlane.xlu0 %808 }
 0x1f6   :  { %813 = vst.msk [vmem:[%s1588_s5 + $0x18] sm:$0xff] %vm797_vm1, %v809_v4 }
 0x1f7   :  { %992 = dma.done.wait [#allocation3], 512  }
 0x1f8   :  { %993 = vsyncadd [#allocation3], 4294966784 }
 0x1f9   :  { %837 = vsyncpa [#allocation3], 1 }

</bundles_post_ra>
